<compile_context>
chip_gen: v7x
topology: tpu7x:2x2x1
jax: 0.10.0
libtpu: 0.0.40
codegen_flags: <defaults>
</compile_context>

<pallas_src>
import functools

import jax
import jax.numpy as jnp
from jax.experimental import pallas as pl
from jax.experimental.pallas import tpu as pltpu


def _pick_q_tile(n):
    """Largest q-tile (multiple of 8, ~256-512) dividing N; full N if small."""
    if n <= 512:
        return n
    for t in (512, 256, 128, 64, 32, 16, 8):
        if n % t == 0:
            return t
    return n


def _vmem_limit_bytes(default=48 * 1024 * 1024):
    """~85% of physical VMEM (headroom for Mosaic internal scratch/semaphores).

    v5e/v6e (128 MiB/TC) -> ~109 MiB; v7x (64 MiB/TC) -> ~54 MiB.
    Falls back to a conservative 48 MiB if the hardware query is unavailable.
    """
    try:
        cap = getattr(pltpu.get_tpu_info(), "vmem_capacity_bytes", None)
        if cap:
            return int(cap * 0.85)
    except Exception:
        pass
    return default


def _attention_kernel(x_ref, wqkv_ref, wp_ref, bp_ref, o_ref, qkv_s, acc_s,
                      *, num_heads, q_tile):
    N = x_ref.shape[1]
    C = x_ref.shape[2]
    hd = C // num_heads
    cdt = qkv_s.dtype            # MXU operand dtype (bf16 on the f32 path)
    qi = pl.program_id(1)

    # Full-width (N, C) @ (C, 3C) QKV projection, computed once per batch
    # element (first q tile) and kept resident in VMEM across the q-tile axis.
    @pl.when(qi == 0)
    def _():
        qkv_s[...] = jnp.dot(x_ref[0], wqkv_ref[...],
                             preferred_element_type=jnp.float32).astype(cdt)

    row0 = pl.multiple_of(qi * q_tile, q_tile)

    # Static head loop: per-head column offsets are compile-time constants, so
    # no dynamic lane-offset relayouts.  (Prefer configs with hd % 128 == 0 for
    # fully lane-dense per-head slices.)
    for h in range(num_heads):
        qh = qkv_s[pl.ds(row0, q_tile), h * hd:(h + 1) * hd]           # (tq, hd), pre-scaled
        kh = qkv_s[:, C + h * hd:C + (h + 1) * hd]                     # (N, hd)
        vh = qkv_s[:, 2 * C + h * hd:2 * C + (h + 1) * hd]             # (N, hd)

        # Contract on the last dim of BOTH operands -> no explicit kh.T.
        s = jax.lax.dot_general(qh, kh, (((1,), (1,)), ((), ())),
                                preferred_element_type=jnp.float32)    # (tq, N) f32

        # Numerically-stable softmax with deferred normalization (each row sees
        # the full key range, so no online-softmax carry is needed).
        s = s - jnp.max(s, axis=-1, keepdims=True)
        p = jnp.exp(s)
        denom = jnp.sum(p, axis=-1, keepdims=True)                     # (tq, 1) f32

        # Unnormalized p @ v, then normalize the small (tq, hd) result.
        oh = jnp.dot(p.astype(cdt), vh, preferred_element_type=jnp.float32)
        oh = oh * pl.reciprocal(denom, approx=True)

        # Write this head's columns into the concat scratch; only one head's
        # intermediates are live at a time.
        acc_s[:, h * hd:(h + 1) * hd] = oh.astype(cdt)

    # Lane-dense (tq, C) @ (C, C) output projection + bias, full-width store.
    out = jnp.dot(acc_s[...], wp_ref[...], preferred_element_type=jnp.float32)
    out = out + bp_ref[...].astype(jnp.float32)
    o_ref[0] = out.astype(o_ref.dtype)


def attention_forward(x, qkv_weight, proj_weight, proj_bias, num_heads,
                      *, q_tile=None, mxu_dtype=None):
    """Pallas equivalent of Attention.forward.

    x:           (B, N, C)
    qkv_weight:  (3C, C)   -- torch nn.Linear weight layout (out, in)
    proj_weight: (C, C)    -- torch nn.Linear weight layout (out, in)
    proj_bias:   (C,)
    """
    B, N, C = x.shape
    H = num_heads
    hd = C // H
    scale = float(hd) ** -0.5
    out_dtype = x.dtype

    # MXU operands in bf16 (f32 accumulation inside the kernel); f32 matmuls
    # are ~3x slower on the bf16 MXU arrays of v5e/v6e/v7x.
    if mxu_dtype is None:
        mxu_dtype = jnp.bfloat16 if x.dtype == jnp.float32 else x.dtype

    # torch Linear: y = x @ W.T. The 3C output axis is ordered (3, H, hd), so
    # q / k / v are contiguous C-column slabs of W.T with contiguous hd-wide
    # head groups inside each slab.  Fold the softmax scale into the q columns
    # BEFORE the low-precision cast (one fewer rounding step).
    wqkv = qkv_weight.T                                                # (C, 3C)
    wqkv = jnp.concatenate([wqkv[:, :C] * scale, wqkv[:, C:]], axis=1).astype(mxu_dtype)
    wp = proj_weight.T.astype(mxu_dtype)                               # (C, C)
    bp = proj_bias.reshape(1, C).astype(jnp.float32)                   # (1, C)
    x_c = x.astype(mxu_dtype)

    tq = q_tile if q_tile is not None else _pick_q_tile(N)
    assert N % tq == 0, f"q tile {tq} must divide N={N}"
    nq = N // tq

    kernel = functools.partial(_attention_kernel, num_heads=H, q_tile=tq)

    return pl.pallas_call(
        kernel,
        out_shape=jax.ShapeDtypeStruct((B, N, C), out_dtype),
        grid_spec=pltpu.PrefetchScalarGridSpec(
            num_scalar_prefetch=0,
            grid=(B, nq),
            in_specs=[
                pl.BlockSpec((1, N, C), lambda b, q: (b, 0, 0)),    # x (per batch)
                pl.BlockSpec((C, 3 * C), lambda b, q: (0, 0)),      # Wqkv (grid-invariant)
                pl.BlockSpec((C, C), lambda b, q: (0, 0)),          # Wproj (grid-invariant)
                pl.BlockSpec((1, C), lambda b, q: (0, 0)),          # proj bias
            ],
            out_specs=pl.BlockSpec((1, tq, C), lambda b, q: (b, q, 0)),
            scratch_shapes=[
                pltpu.VMEM((N, 3 * C), mxu_dtype),   # per-batch QKV projection
                pltpu.VMEM((tq, C), mxu_dtype),      # per-q-tile head-concat buffer
            ],
        ),
        compiler_params=pltpu.CompilerParams(
            dimension_semantics=("parallel", "arbitrary"),
            vmem_limit_bytes=_vmem_limit_bytes(),
        ),
    )(x_c, wqkv, wp, bp)


def attention_reference(x, qkv_weight, proj_weight, proj_bias, num_heads):
    """Pure-JAX (f32) reference mirroring the PyTorch forward exactly."""
    B, N, C = x.shape
    H = num_heads
    hd = C // H
    scale = float(hd) ** -0.5

    qkv = x @ qkv_weight.T                                        # (B, N, 3C)
    qkv = qkv.reshape(B, N, 3, H, hd).transpose(2, 0, 3, 1, 4)    # (3, B, H, N, hd)
    q, k, v = qkv[0], qkv[1], qkv[2]
    attn = jnp.einsum("bhnd,bhmd->bhnm", q, k) * scale
    attn = jax.nn.softmax(attn, axis=-1)
    out = jnp.einsum("bhnm,bhmd->bhnd", attn, v)                  # (B, H, N, hd)
    out = out.transpose(0, 2, 1, 3).reshape(B, N, C)
    return out @ proj_weight.T + proj_bias


if __name__ == "__main__":
    # Small deterministic config.
    B, N, C, H = 2, 8, 32, 8

    key = jax.random.PRNGKey(0)
    kx, kqkv, kpw, kpb = jax.random.split(key, 4)

    x = jax.random.normal(kx, (B, N, C), dtype=jnp.float32)
    qkv_weight = jax.random.normal(kqkv, (3 * C, C), dtype=jnp.float32) * 0.05
    proj_weight = jax.random.normal(kpw, (C, C), dtype=jnp.float32) * 0.05
    proj_bias = jax.random.normal(kpb, (C,), dtype=jnp.float32) * 0.05

    out = attention_forward(x, qkv_weight, proj_weight, proj_bias, H)
    out = jax.block_until_ready(out)

    ref = attention_reference(x, qkv_weight, proj_weight, proj_bias, H)
    assert out.shape == (B, N, C)
    # bf16 MXU operands + approx EUP reciprocal -> looser tolerance than pure f32.
    assert jnp.allclose(out, ref, atol=2e-2, rtol=2e-2), (
        f"max abs diff {jnp.max(jnp.abs(out - ref))}"
    )

    print("KERNEL_OK")
</pallas_src>

<mosaic_0001>
module attributes {stable_mosaic.version = 11 : i64} {
  func.func @_attention_kernel(%arg0: i32, %arg1: i32, %arg2: memref<1x8x32xbf16, #tpu.memory_space<vmem>>, %arg3: memref<32x96xbf16, #tpu.memory_space<vmem>>, %arg4: memref<32x32xbf16, #tpu.memory_space<vmem>>, %arg5: memref<1x32xf32, #tpu.memory_space<vmem>>, %arg6: memref<1x8x32xf32, #tpu.memory_space<vmem>>, %arg7: memref<8x96xbf16, #tpu.memory_space<vmem>>, %arg8: memref<8x32xbf16, #tpu.memory_space<vmem>>) attributes {dimension_semantics = [#tpu.dimension_semantics<parallel>, #tpu.dimension_semantics<arbitrary>], iteration_bounds = array<i64: 2, 1>, scalar_prefetch = 0 : i64, scratch_operands = 2 : i64, tpu.core_type = #tpu.core_type<tc>, window_params = [{transform_indices = @transform_0, window_bounds = array<i64: 1, 8, 32>}, {pipeline_mode = #tpu.pipeline_mode<synchronous>, transform_indices = @transform_1, window_bounds = array<i64: 32, 96>}, {pipeline_mode = #tpu.pipeline_mode<synchronous>, transform_indices = @transform_2, window_bounds = array<i64: 32, 32>}, {pipeline_mode = #tpu.pipeline_mode<synchronous>, transform_indices = @transform_3, window_bounds = array<i64: 1, 32>}, {transform_indices = @transform_4, window_bounds = array<i64: 1, 8, 32>}]} {
    %c0_i32 = arith.constant 0 : i32
    %0 = arith.cmpi eq, %arg1, %c0_i32 : i32
    %1 = arith.extui %0 : i1 to i32
    %c0_i32_0 = arith.constant 0 : i32
    %2 = arith.cmpi ne, %1, %c0_i32_0 : i32
    scf.if %2 {
      %c0_74 = arith.constant 0 : index
      %c0_75 = arith.constant 0 : index
      %c0_76 = arith.constant 0 : index
      %166 = vector.load %arg2[%c0_74, %c0_75, %c0_76] : memref<1x8x32xbf16, #tpu.memory_space<vmem>>, vector<1x8x32xbf16>
      %167 = vector.shape_cast %166 : vector<1x8x32xbf16> to vector<8x32xbf16>
      %c0_77 = arith.constant 0 : index
      %c0_78 = arith.constant 0 : index
      %168 = vector.load %arg3[%c0_77, %c0_78] : memref<32x96xbf16, #tpu.memory_space<vmem>>, vector<32x96xbf16>
      %cst_79 = arith.constant dense<0.000000e+00> : vector<8x96xf32>
      %169 = tpu.matmul %167, %168, %cst_79 {dimension_numbers = #tpu.dot_dimension_numbers<[1], [0], [0], [1], [0, 0, 1, 1], [], []>} : vector<8x32xbf16>, vector<32x96xbf16>, vector<8x96xf32> -> vector<8x96xf32>
      %170 = arith.truncf %169 : vector<8x96xf32> to vector<8x96xbf16>
      %c0_80 = arith.constant 0 : index
      %c0_81 = arith.constant 0 : index
      %171 = vector.load %arg7[%c0_80, %c0_81] : memref<8x96xbf16, #tpu.memory_space<vmem>>, vector<8x96xbf16>
      tpu.vector_store %arg7[%c0_80, %c0_81], %170 {strides = array<i32>} : memref<8x96xbf16, #tpu.memory_space<vmem>>, vector<8x96xbf16>,
    } else {
    }
    %c8_i32 = arith.constant 8 : i32
    %3 = arith.muli %arg1, %c8_i32 : i32
    %4 = tpu.assume_multiple %3, 8 : i32
    %5 = arith.index_cast %4 : i32 to index
    %c0 = arith.constant 0 : index
    %6 = vector.load %arg7[%5, %c0] : memref<8x96xbf16, #tpu.memory_space<vmem>>, vector<8x4xbf16>
    %c0_1 = arith.constant 0 : index
    %c32 = arith.constant 32 : index
    %7 = vector.load %arg7[%c0_1, %c32] : memref<8x96xbf16, #tpu.memory_space<vmem>>, vector<8x4xbf16>
    %c0_2 = arith.constant 0 : index
    %c64 = arith.constant 64 : index
    %8 = vector.load %arg7[%c0_2, %c64] : memref<8x96xbf16, #tpu.memory_space<vmem>>, vector<8x4xbf16>
    %cst = arith.constant dense<0.000000e+00> : vector<8x8xf32>
    %9 = tpu.matmul %6, %7, %cst {dimension_numbers = #tpu.dot_dimension_numbers<[1], [1], [0], [0], [0, 0, 1, 0], [], []>} : vector<8x4xbf16>, vector<8x4xbf16>, vector<8x8xf32> -> vector<8x8xf32>
    %cst_3 = arith.constant dense<0xFF800000> : vector<8xf32>
    %10 = vector.multi_reduction <maximumf>, %9, %cst_3 [1] : vector<8x8xf32> to vector<8xf32>
    %11 = vector.shape_cast %10 : vector<8xf32> to vector<8x1xf32>
    %12 = vector.broadcast %11 : vector<8x1xf32> to vector<8x8xf32>
    %13 = arith.subf %9, %12 : vector<8x8xf32>
    %14 = math.exp %13 : vector<8x8xf32>
    %cst_4 = arith.constant dense<0.000000e+00> : vector<8xf32>
    %15 = vector.multi_reduction <add>, %14, %cst_4 [1] : vector<8x8xf32> to vector<8xf32>
    %16 = vector.shape_cast %15 : vector<8xf32> to vector<8x1xf32>
    %17 = arith.truncf %14 : vector<8x8xf32> to vector<8x8xbf16>
    %cst_5 = arith.constant dense<0.000000e+00> : vector<8x4xf32>
    %18 = tpu.matmul %17, %8, %cst_5 {dimension_numbers = #tpu.dot_dimension_numbers<[1], [0], [0], [1], [0, 0, 1, 1], [], []>} : vector<8x8xbf16>, vector<8x4xbf16>, vector<8x4xf32> -> vector<8x4xf32>
    %19 = tpu.reciprocal %16 {approx = true} : vector<8x1xf32> -> vector<8x1xf32>
    %20 = vector.broadcast %19 : vector<8x1xf32> to vector<8x4xf32>
    %21 = arith.mulf %18, %20 : vector<8x4xf32>
    %22 = arith.truncf %21 : vector<8x4xf32> to vector<8x4xbf16>
    %c0_6 = arith.constant 0 : index
    %c0_7 = arith.constant 0 : index
    %23 = vector.load %arg8[%c0_6, %c0_7] : memref<8x32xbf16, #tpu.memory_space<vmem>>, vector<8x4xbf16>
    tpu.vector_store %arg8[%c0_6, %c0_7], %22 {strides = array<i32>} : memref<8x32xbf16, #tpu.memory_space<vmem>>, vector<8x4xbf16>,
    %24 = arith.index_cast %4 : i32 to index
    %c4 = arith.constant 4 : index
    %25 = vector.load %arg7[%24, %c4] : memref<8x96xbf16, #tpu.memory_space<vmem>>, vector<8x4xbf16>
    %c0_8 = arith.constant 0 : index
    %c36 = arith.constant 36 : index
    %26 = vector.load %arg7[%c0_8, %c36] : memref<8x96xbf16, #tpu.memory_space<vmem>>, vector<8x4xbf16>
    %c0_9 = arith.constant 0 : index
    %c68 = arith.constant 68 : index
    %27 = vector.load %arg7[%c0_9, %c68] : memref<8x96xbf16, #tpu.memory_space<vmem>>, vector<8x4xbf16>
    %cst_10 = arith.constant dense<0.000000e+00> : vector<8x8xf32>
    %28 = tpu.matmul %25, %26, %cst_10 {dimension_numbers = #tpu.dot_dimension_numbers<[1], [1], [0], [0], [0, 0, 1, 0], [], []>} : vector<8x4xbf16>, vector<8x4xbf16>, vector<8x8xf32> -> vector<8x8xf32>
    %cst_11 = arith.constant dense<0xFF800000> : vector<8xf32>
    %29 = vector.multi_reduction <maximumf>, %28, %cst_11 [1] : vector<8x8xf32> to vector<8xf32>
    %30 = vector.shape_cast %29 : vector<8xf32> to vector<8x1xf32>
    %31 = vector.broadcast %30 : vector<8x1xf32> to vector<8x8xf32>
    %32 = arith.subf %28, %31 : vector<8x8xf32>
    %33 = math.exp %32 : vector<8x8xf32>
    %cst_12 = arith.constant dense<0.000000e+00> : vector<8xf32>
    %34 = vector.multi_reduction <add>, %33, %cst_12 [1] : vector<8x8xf32> to vector<8xf32>
    %35 = vector.shape_cast %34 : vector<8xf32> to vector<8x1xf32>
    %36 = arith.truncf %33 : vector<8x8xf32> to vector<8x8xbf16>
    %cst_13 = arith.constant dense<0.000000e+00> : vector<8x4xf32>
    %37 = tpu.matmul %36, %27, %cst_13 {dimension_numbers = #tpu.dot_dimension_numbers<[1], [0], [0], [1], [0, 0, 1, 1], [], []>} : vector<8x8xbf16>, vector<8x4xbf16>, vector<8x4xf32> -> vector<8x4xf32>
    %38 = tpu.reciprocal %35 {approx = true} : vector<8x1xf32> -> vector<8x1xf32>
    %39 = vector.broadcast %38 : vector<8x1xf32> to vector<8x4xf32>
    %40 = arith.mulf %37, %39 : vector<8x4xf32>
    %41 = arith.truncf %40 : vector<8x4xf32> to vector<8x4xbf16>
    %c0_14 = arith.constant 0 : index
    %c4_15 = arith.constant 4 : index
    %42 = vector.load %arg8[%c0_14, %c4_15] : memref<8x32xbf16, #tpu.memory_space<vmem>>, vector<8x4xbf16>
    tpu.vector_store %arg8[%c0_14, %c4_15], %41 {strides = array<i32>} : memref<8x32xbf16, #tpu.memory_space<vmem>>, vector<8x4xbf16>,
    %43 = arith.index_cast %4 : i32 to index
    %c8 = arith.constant 8 : index
    %44 = vector.load %arg7[%43, %c8] : memref<8x96xbf16, #tpu.memory_space<vmem>>, vector<8x4xbf16>
    %c0_16 = arith.constant 0 : index
    %c40 = arith.constant 40 : index
    %45 = vector.load %arg7[%c0_16, %c40] : memref<8x96xbf16, #tpu.memory_space<vmem>>, vector<8x4xbf16>
    %c0_17 = arith.constant 0 : index
    %c72 = arith.constant 72 : index
    %46 = vector.load %arg7[%c0_17, %c72] : memref<8x96xbf16, #tpu.memory_space<vmem>>, vector<8x4xbf16>
    %cst_18 = arith.constant dense<0.000000e+00> : vector<8x8xf32>
    %47 = tpu.matmul %44, %45, %cst_18 {dimension_numbers = #tpu.dot_dimension_numbers<[1], [1], [0], [0], [0, 0, 1, 0], [], []>} : vector<8x4xbf16>, vector<8x4xbf16>, vector<8x8xf32> -> vector<8x8xf32>
    %cst_19 = arith.constant dense<0xFF800000> : vector<8xf32>
    %48 = vector.multi_reduction <maximumf>, %47, %cst_19 [1] : vector<8x8xf32> to vector<8xf32>
    %49 = vector.shape_cast %48 : vector<8xf32> to vector<8x1xf32>
    %50 = vector.broadcast %49 : vector<8x1xf32> to vector<8x8xf32>
    %51 = arith.subf %47, %50 : vector<8x8xf32>
    %52 = math.exp %51 : vector<8x8xf32>
    %cst_20 = arith.constant dense<0.000000e+00> : vector<8xf32>
    %53 = vector.multi_reduction <add>, %52, %cst_20 [1] : vector<8x8xf32> to vector<8xf32>
    %54 = vector.shape_cast %53 : vector<8xf32> to vector<8x1xf32>
    %55 = arith.truncf %52 : vector<8x8xf32> to vector<8x8xbf16>
    %cst_21 = arith.constant dense<0.000000e+00> : vector<8x4xf32>
    %56 = tpu.matmul %55, %46, %cst_21 {dimension_numbers = #tpu.dot_dimension_numbers<[1], [0], [0], [1], [0, 0, 1, 1], [], []>} : vector<8x8xbf16>, vector<8x4xbf16>, vector<8x4xf32> -> vector<8x4xf32>
    %57 = tpu.reciprocal %54 {approx = true} : vector<8x1xf32> -> vector<8x1xf32>
    %58 = vector.broadcast %57 : vector<8x1xf32> to vector<8x4xf32>
    %59 = arith.mulf %56, %58 : vector<8x4xf32>
    %60 = arith.truncf %59 : vector<8x4xf32> to vector<8x4xbf16>
    %c0_22 = arith.constant 0 : index
    %c8_23 = arith.constant 8 : index
    %61 = vector.load %arg8[%c0_22, %c8_23] : memref<8x32xbf16, #tpu.memory_space<vmem>>, vector<8x4xbf16>
    tpu.vector_store %arg8[%c0_22, %c8_23], %60 {strides = array<i32>} : memref<8x32xbf16, #tpu.memory_space<vmem>>, vector<8x4xbf16>,
    %62 = arith.index_cast %4 : i32 to index
    %c12 = arith.constant 12 : index
    %63 = vector.load %arg7[%62, %c12] : memref<8x96xbf16, #tpu.memory_space<vmem>>, vector<8x4xbf16>
    %c0_24 = arith.constant 0 : index
    %c44 = arith.constant 44 : index
    %64 = vector.load %arg7[%c0_24, %c44] : memref<8x96xbf16, #tpu.memory_space<vmem>>, vector<8x4xbf16>
    %c0_25 = arith.constant 0 : index
    %c76 = arith.constant 76 : index
    %65 = vector.load %arg7[%c0_25, %c76] : memref<8x96xbf16, #tpu.memory_space<vmem>>, vector<8x4xbf16>
    %cst_26 = arith.constant dense<0.000000e+00> : vector<8x8xf32>
    %66 = tpu.matmul %63, %64, %cst_26 {dimension_numbers = #tpu.dot_dimension_numbers<[1], [1], [0], [0], [0, 0, 1, 0], [], []>} : vector<8x4xbf16>, vector<8x4xbf16>, vector<8x8xf32> -> vector<8x8xf32>
    %cst_27 = arith.constant dense<0xFF800000> : vector<8xf32>
    %67 = vector.multi_reduction <maximumf>, %66, %cst_27 [1] : vector<8x8xf32> to vector<8xf32>
    %68 = vector.shape_cast %67 : vector<8xf32> to vector<8x1xf32>
    %69 = vector.broadcast %68 : vector<8x1xf32> to vector<8x8xf32>
    %70 = arith.subf %66, %69 : vector<8x8xf32>
    %71 = math.exp %70 : vector<8x8xf32>
    %cst_28 = arith.constant dense<0.000000e+00> : vector<8xf32>
    %72 = vector.multi_reduction <add>, %71, %cst_28 [1] : vector<8x8xf32> to vector<8xf32>
    %73 = vector.shape_cast %72 : vector<8xf32> to vector<8x1xf32>
    %74 = arith.truncf %71 : vector<8x8xf32> to vector<8x8xbf16>
    %cst_29 = arith.constant dense<0.000000e+00> : vector<8x4xf32>
    %75 = tpu.matmul %74, %65, %cst_29 {dimension_numbers = #tpu.dot_dimension_numbers<[1], [0], [0], [1], [0, 0, 1, 1], [], []>} : vector<8x8xbf16>, vector<8x4xbf16>, vector<8x4xf32> -> vector<8x4xf32>
    %76 = tpu.reciprocal %73 {approx = true} : vector<8x1xf32> -> vector<8x1xf32>
    %77 = vector.broadcast %76 : vector<8x1xf32> to vector<8x4xf32>
    %78 = arith.mulf %75, %77 : vector<8x4xf32>
    %79 = arith.truncf %78 : vector<8x4xf32> to vector<8x4xbf16>
    %c0_30 = arith.constant 0 : index
    %c12_31 = arith.constant 12 : index
    %80 = vector.load %arg8[%c0_30, %c12_31] : memref<8x32xbf16, #tpu.memory_space<vmem>>, vector<8x4xbf16>
    tpu.vector_store %arg8[%c0_30, %c12_31], %79 {strides = array<i32>} : memref<8x32xbf16, #tpu.memory_space<vmem>>, vector<8x4xbf16>,
    %81 = arith.index_cast %4 : i32 to index
    %c16 = arith.constant 16 : index
    %82 = vector.load %arg7[%81, %c16] : memref<8x96xbf16, #tpu.memory_space<vmem>>, vector<8x4xbf16>
    %c0_32 = arith.constant 0 : index
    %c48 = arith.constant 48 : index
    %83 = vector.load %arg7[%c0_32, %c48] : memref<8x96xbf16, #tpu.memory_space<vmem>>, vector<8x4xbf16>
    %c0_33 = arith.constant 0 : index
    %c80 = arith.constant 80 : index
    %84 = vector.load %arg7[%c0_33, %c80] : memref<8x96xbf16, #tpu.memory_space<vmem>>, vector<8x4xbf16>
    %cst_34 = arith.constant dense<0.000000e+00> : vector<8x8xf32>
    %85 = tpu.matmul %82, %83, %cst_34 {dimension_numbers = #tpu.dot_dimension_numbers<[1], [1], [0], [0], [0, 0, 1, 0], [], []>} : vector<8x4xbf16>, vector<8x4xbf16>, vector<8x8xf32> -> vector<8x8xf32>
    %cst_35 = arith.constant dense<0xFF800000> : vector<8xf32>
    %86 = vector.multi_reduction <maximumf>, %85, %cst_35 [1] : vector<8x8xf32> to vector<8xf32>
    %87 = vector.shape_cast %86 : vector<8xf32> to vector<8x1xf32>
    %88 = vector.broadcast %87 : vector<8x1xf32> to vector<8x8xf32>
    %89 = arith.subf %85, %88 : vector<8x8xf32>
    %90 = math.exp %89 : vector<8x8xf32>
    %cst_36 = arith.constant dense<0.000000e+00> : vector<8xf32>
    %91 = vector.multi_reduction <add>, %90, %cst_36 [1] : vector<8x8xf32> to vector<8xf32>
    %92 = vector.shape_cast %91 : vector<8xf32> to vector<8x1xf32>
    %93 = arith.truncf %90 : vector<8x8xf32> to vector<8x8xbf16>
    %cst_37 = arith.constant dense<0.000000e+00> : vector<8x4xf32>
    %94 = tpu.matmul %93, %84, %cst_37 {dimension_numbers = #tpu.dot_dimension_numbers<[1], [0], [0], [1], [0, 0, 1, 1], [], []>} : vector<8x8xbf16>, vector<8x4xbf16>, vector<8x4xf32> -> vector<8x4xf32>
    %95 = tpu.reciprocal %92 {approx = true} : vector<8x1xf32> -> vector<8x1xf32>
    %96 = vector.broadcast %95 : vector<8x1xf32> to vector<8x4xf32>
    %97 = arith.mulf %94, %96 : vector<8x4xf32>
    %98 = arith.truncf %97 : vector<8x4xf32> to vector<8x4xbf16>
    %c0_38 = arith.constant 0 : index
    %c16_39 = arith.constant 16 : index
    %99 = vector.load %arg8[%c0_38, %c16_39] : memref<8x32xbf16, #tpu.memory_space<vmem>>, vector<8x4xbf16>
    tpu.vector_store %arg8[%c0_38, %c16_39], %98 {strides = array<i32>} : memref<8x32xbf16, #tpu.memory_space<vmem>>, vector<8x4xbf16>,
    %100 = arith.index_cast %4 : i32 to index
    %c20 = arith.constant 20 : index
    %101 = vector.load %arg7[%100, %c20] : memref<8x96xbf16, #tpu.memory_space<vmem>>, vector<8x4xbf16>
    %c0_40 = arith.constant 0 : index
    %c52 = arith.constant 52 : index
    %102 = vector.load %arg7[%c0_40, %c52] : memref<8x96xbf16, #tpu.memory_space<vmem>>, vector<8x4xbf16>
    %c0_41 = arith.constant 0 : index
    %c84 = arith.constant 84 : index
    %103 = vector.load %arg7[%c0_41, %c84] : memref<8x96xbf16, #tpu.memory_space<vmem>>, vector<8x4xbf16>
    %cst_42 = arith.constant dense<0.000000e+00> : vector<8x8xf32>
    %104 = tpu.matmul %101, %102, %cst_42 {dimension_numbers = #tpu.dot_dimension_numbers<[1], [1], [0], [0], [0, 0, 1, 0], [], []>} : vector<8x4xbf16>, vector<8x4xbf16>, vector<8x8xf32> -> vector<8x8xf32>
    %cst_43 = arith.constant dense<0xFF800000> : vector<8xf32>
    %105 = vector.multi_reduction <maximumf>, %104, %cst_43 [1] : vector<8x8xf32> to vector<8xf32>
    %106 = vector.shape_cast %105 : vector<8xf32> to vector<8x1xf32>
    %107 = vector.broadcast %106 : vector<8x1xf32> to vector<8x8xf32>
    %108 = arith.subf %104, %107 : vector<8x8xf32>
    %109 = math.exp %108 : vector<8x8xf32>
    %cst_44 = arith.constant dense<0.000000e+00> : vector<8xf32>
    %110 = vector.multi_reduction <add>, %109, %cst_44 [1] : vector<8x8xf32> to vector<8xf32>
    %111 = vector.shape_cast %110 : vector<8xf32> to vector<8x1xf32>
    %112 = arith.truncf %109 : vector<8x8xf32> to vector<8x8xbf16>
    %cst_45 = arith.constant dense<0.000000e+00> : vector<8x4xf32>
    %113 = tpu.matmul %112, %103, %cst_45 {dimension_numbers = #tpu.dot_dimension_numbers<[1], [0], [0], [1], [0, 0, 1, 1], [], []>} : vector<8x8xbf16>, vector<8x4xbf16>, vector<8x4xf32> -> vector<8x4xf32>
    %114 = tpu.reciprocal %111 {approx = true} : vector<8x1xf32> -> vector<8x1xf32>
    %115 = vector.broadcast %114 : vector<8x1xf32> to vector<8x4xf32>
    %116 = arith.mulf %113, %115 : vector<8x4xf32>
    %117 = arith.truncf %116 : vector<8x4xf32> to vector<8x4xbf16>
    %c0_46 = arith.constant 0 : index
    %c20_47 = arith.constant 20 : index
    %118 = vector.load %arg8[%c0_46, %c20_47] : memref<8x32xbf16, #tpu.memory_space<vmem>>, vector<8x4xbf16>
    tpu.vector_store %arg8[%c0_46, %c20_47], %117 {strides = array<i32>} : memref<8x32xbf16, #tpu.memory_space<vmem>>, vector<8x4xbf16>,
    %119 = arith.index_cast %4 : i32 to index
    %c24 = arith.constant 24 : index
    %120 = vector.load %arg7[%119, %c24] : memref<8x96xbf16, #tpu.memory_space<vmem>>, vector<8x4xbf16>
    %c0_48 = arith.constant 0 : index
    %c56 = arith.constant 56 : index
    %121 = vector.load %arg7[%c0_48, %c56] : memref<8x96xbf16, #tpu.memory_space<vmem>>, vector<8x4xbf16>
    %c0_49 = arith.constant 0 : index
    %c88 = arith.constant 88 : index
    %122 = vector.load %arg7[%c0_49, %c88] : memref<8x96xbf16, #tpu.memory_space<vmem>>, vector<8x4xbf16>
    %cst_50 = arith.constant dense<0.000000e+00> : vector<8x8xf32>
    %123 = tpu.matmul %120, %121, %cst_50 {dimension_numbers = #tpu.dot_dimension_numbers<[1], [1], [0], [0], [0, 0, 1, 0], [], []>} : vector<8x4xbf16>, vector<8x4xbf16>, vector<8x8xf32> -> vector<8x8xf32>
    %cst_51 = arith.constant dense<0xFF800000> : vector<8xf32>
    %124 = vector.multi_reduction <maximumf>, %123, %cst_51 [1] : vector<8x8xf32> to vector<8xf32>
    %125 = vector.shape_cast %124 : vector<8xf32> to vector<8x1xf32>
    %126 = vector.broadcast %125 : vector<8x1xf32> to vector<8x8xf32>
    %127 = arith.subf %123, %126 : vector<8x8xf32>
    %128 = math.exp %127 : vector<8x8xf32>
    %cst_52 = arith.constant dense<0.000000e+00> : vector<8xf32>
    %129 = vector.multi_reduction <add>, %128, %cst_52 [1] : vector<8x8xf32> to vector<8xf32>
    %130 = vector.shape_cast %129 : vector<8xf32> to vector<8x1xf32>
    %131 = arith.truncf %128 : vector<8x8xf32> to vector<8x8xbf16>
    %cst_53 = arith.constant dense<0.000000e+00> : vector<8x4xf32>
    %132 = tpu.matmul %131, %122, %cst_53 {dimension_numbers = #tpu.dot_dimension_numbers<[1], [0], [0], [1], [0, 0, 1, 1], [], []>} : vector<8x8xbf16>, vector<8x4xbf16>, vector<8x4xf32> -> vector<8x4xf32>
    %133 = tpu.reciprocal %130 {approx = true} : vector<8x1xf32> -> vector<8x1xf32>
    %134 = vector.broadcast %133 : vector<8x1xf32> to vector<8x4xf32>
    %135 = arith.mulf %132, %134 : vector<8x4xf32>
    %136 = arith.truncf %135 : vector<8x4xf32> to vector<8x4xbf16>
    %c0_54 = arith.constant 0 : index
    %c24_55 = arith.constant 24 : index
    %137 = vector.load %arg8[%c0_54, %c24_55] : memref<8x32xbf16, #tpu.memory_space<vmem>>, vector<8x4xbf16>
    tpu.vector_store %arg8[%c0_54, %c24_55], %136 {strides = array<i32>} : memref<8x32xbf16, #tpu.memory_space<vmem>>, vector<8x4xbf16>,
    %138 = arith.index_cast %4 : i32 to index
    %c28 = arith.constant 28 : index
    %139 = vector.load %arg7[%138, %c28] : memref<8x96xbf16, #tpu.memory_space<vmem>>, vector<8x4xbf16>
    %c0_56 = arith.constant 0 : index
    %c60 = arith.constant 60 : index
    %140 = vector.load %arg7[%c0_56, %c60] : memref<8x96xbf16, #tpu.memory_space<vmem>>, vector<8x4xbf16>
    %c0_57 = arith.constant 0 : index
    %c92 = arith.constant 92 : index
    %141 = vector.load %arg7[%c0_57, %c92] : memref<8x96xbf16, #tpu.memory_space<vmem>>, vector<8x4xbf16>
    %cst_58 = arith.constant dense<0.000000e+00> : vector<8x8xf32>
    %142 = tpu.matmul %139, %140, %cst_58 {dimension_numbers = #tpu.dot_dimension_numbers<[1], [1], [0], [0], [0, 0, 1, 0], [], []>} : vector<8x4xbf16>, vector<8x4xbf16>, vector<8x8xf32> -> vector<8x8xf32>
    %cst_59 = arith.constant dense<0xFF800000> : vector<8xf32>
    %143 = vector.multi_reduction <maximumf>, %142, %cst_59 [1] : vector<8x8xf32> to vector<8xf32>
    %144 = vector.shape_cast %143 : vector<8xf32> to vector<8x1xf32>
    %145 = vector.broadcast %144 : vector<8x1xf32> to vector<8x8xf32>
    %146 = arith.subf %142, %145 : vector<8x8xf32>
    %147 = math.exp %146 : vector<8x8xf32>
    %cst_60 = arith.constant dense<0.000000e+00> : vector<8xf32>
    %148 = vector.multi_reduction <add>, %147, %cst_60 [1] : vector<8x8xf32> to vector<8xf32>
    %149 = vector.shape_cast %148 : vector<8xf32> to vector<8x1xf32>
    %150 = arith.truncf %147 : vector<8x8xf32> to vector<8x8xbf16>
    %cst_61 = arith.constant dense<0.000000e+00> : vector<8x4xf32>
    %151 = tpu.matmul %150, %141, %cst_61 {dimension_numbers = #tpu.dot_dimension_numbers<[1], [0], [0], [1], [0, 0, 1, 1], [], []>} : vector<8x8xbf16>, vector<8x4xbf16>, vector<8x4xf32> -> vector<8x4xf32>
    %152 = tpu.reciprocal %149 {approx = true} : vector<8x1xf32> -> vector<8x1xf32>
    %153 = vector.broadcast %152 : vector<8x1xf32> to vector<8x4xf32>
    %154 = arith.mulf %151, %153 : vector<8x4xf32>
    %155 = arith.truncf %154 : vector<8x4xf32> to vector<8x4xbf16>
    %c0_62 = arith.constant 0 : index
    %c28_63 = arith.constant 28 : index
    %156 = vector.load %arg8[%c0_62, %c28_63] : memref<8x32xbf16, #tpu.memory_space<vmem>>, vector<8x4xbf16>
    tpu.vector_store %arg8[%c0_62, %c28_63], %155 {strides = array<i32>} : memref<8x32xbf16, #tpu.memory_space<vmem>>, vector<8x4xbf16>,
    %c0_64 = arith.constant 0 : index
    %c0_65 = arith.constant 0 : index
    %157 = vector.load %arg8[%c0_64, %c0_65] : memref<8x32xbf16, #tpu.memory_space<vmem>>, vector<8x32xbf16>
    %c0_66 = arith.constant 0 : index
    %c0_67 = arith.constant 0 : index
    %158 = vector.load %arg4[%c0_66, %c0_67] : memref<32x32xbf16, #tpu.memory_space<vmem>>, vector<32x32xbf16>
    %cst_68 = arith.constant dense<0.000000e+00> : vector<8x32xf32>
    %159 = tpu.matmul %157, %158, %cst_68 {dimension_numbers = #tpu.dot_dimension_numbers<[1], [0], [0], [1], [0, 0, 1, 1], [], []>} : vector<8x32xbf16>, vector<32x32xbf16>, vector<8x32xf32> -> vector<8x32xf32>
    %c0_69 = arith.constant 0 : index
    %c0_70 = arith.constant 0 : index
    %160 = vector.load %arg5[%c0_69, %c0_70] : memref<1x32xf32, #tpu.memory_space<vmem>>, vector<1x32xf32>
    %161 = vector.broadcast %160 : vector<1x32xf32> to vector<8x32xf32>
    %162 = arith.addf %159, %161 : vector<8x32xf32>
    %c0_71 = arith.constant 0 : index
    %c0_72 = arith.constant 0 : index
    %c0_73 = arith.constant 0 : index
    %163 = vector.load %arg6[%c0_71, %c0_72, %c0_73] : memref<1x8x32xf32, #tpu.memory_space<vmem>>, vector<1x8x32xf32>
    %164 = vector.shape_cast %163 : vector<1x8x32xf32> to vector<8x32xf32>
    %165 = vector.shape_cast %162 : vector<8x32xf32> to vector<1x8x32xf32>
    tpu.vector_store %arg6[%c0_71, %c0_72, %c0_73], %165 {strides = array<i32>} : memref<1x8x32xf32, #tpu.memory_space<vmem>>, vector<1x8x32xf32>,
    return
  }
  func.func @transform_0(%arg0: i32, %arg1: i32) -> (i32, i32, i32) {
    %c0_i32 = arith.constant 0 : i32
    %c0_i32_0 = arith.constant 0 : i32
    %c0_i32_1 = arith.constant 0 : i32
    return %arg0, %c0_i32, %c0_i32_0 : i32, i32, i32
  }
  func.func @transform_1(%arg0: i32, %arg1: i32) -> (i32, i32) {
    %c0_i32 = arith.constant 0 : i32
    %c0_i32_0 = arith.constant 0 : i32
    %c0_i32_1 = arith.constant 0 : i32
    return %c0_i32, %c0_i32_0 : i32, i32
  }
  func.func @transform_2(%arg0: i32, %arg1: i32) -> (i32, i32) {
    %c0_i32 = arith.constant 0 : i32
    %c0_i32_0 = arith.constant 0 : i32
    %c0_i32_1 = arith.constant 0 : i32
    return %c0_i32, %c0_i32_0 : i32, i32
  }
  func.func @transform_3(%arg0: i32, %arg1: i32) -> (i32, i32) {
    %c0_i32 = arith.constant 0 : i32
    %c0_i32_0 = arith.constant 0 : i32
    %c0_i32_1 = arith.constant 0 : i32
    return %c0_i32, %c0_i32_0 : i32, i32
  }
  func.func @transform_4(%arg0: i32, %arg1: i32) -> (i32, i32, i32) {
    %c0_i32 = arith.constant 0 : i32
    %c0_i32_0 = arith.constant 0 : i32
    return %arg0, %arg1, %c0_i32 : i32, i32, i32
  }
}

</mosaic_0001>

<bundles_post_ra>
// kernel: tpu_custom_call.1
= control target key start
LH: loop header
LB: loop body
LE: loop exit
PB: predicated region body
PF: predicated region fallthrough
CT: control target
= control target key end

     0   :  { %9 = vsyncpa [#allocation5], 0  ;;  %s2564_s0 = inlined_call_operand.hbm [shape: bf16[2,8,32], index: 0, kind: input, shape index: {}]   ;;  %s2565_s1 = inlined_call_operand.hbm [shape: bf16[32,96], index: 1, kind: input, shape index: {}]   ;;  %s2566_s2 = inlined_call_operand.hbm [shape: bf16[32,32], index: 2, kind: input, shape index: {}]   ;;  %s2567_s3 = inlined_call_operand.vmem [shape: f32[1,32], index: 3, kind: input, shape index: {}]   ;;  %s2568_s4 = inlined_call_operand.hbm [shape: f32[2,8,32], index: 4, kind: output, shape index: {}]  }
   0x1   :  { %11 = vsyncpa [#allocation5 + $0x1], 0 }
   0x2   :  { %12 = vsyncpa [#allocation8], 0 }
   0x3   :  { %13 = vsyncpa [#allocation6], 0 }
   0x4   :  { %15 = vsyncpa [#allocation6 + $0x1], 0  ;;  %s2146_s15 = smov 0   ;;  %s2148_s16 = smov 0  }
   0x5   :  { %s2150_s17 = smov 0   ;;  %s2152_s18 = smov 0  }
   0x6   :  { %s2154_s19 = smov 0   ;;  %s2156_s20 = smov 0  }
   0x7 LB: > { %s1522_s21 = sadd.s32 4294967295, %s2081_s20   ;;  %s1523_s22 = sadd.s32 4294967294, %s2081_s20   ;;  %s2081_s20 = sphi %s2156_s20, %s21_s20   ;;  %s2077_s19 = sphi %s2154_s19, %s2590_s19   ;;  %s2073_s18 = sphi %s2152_s18, %s2589_s18   ;;  %s2069_s17 = sphi %s2150_s17, %s2588_s17   ;;  %s2065_s16 = sphi %s2148_s16, %s2587_s16   ;;  %s2061_s15 = sphi %s2146_s15, %s2586_s15  }
   0x8   : > { %p53_p0 = scmp.ne.s32.totalorder %s2065_s16, %s2061_s15  ;;  %p2180_p1 = scmp.eq.s32.totalorder %s1522_s21, 0 }
   0x9   : > { %p2184_p2 = scmp.eq.s32.totalorder %s1522_s21, 1  ;;  %p148_p3 = scmp.eq.s32.totalorder %s1523_s22, 1 }
   0xa   : > { %s2573_s23 = scalar_select %p2180_p1, 1, 0 }
   0xb   : > { %p2190_p4 = por %p2180_p1, %p53_p0  ;;  %p1524_p5 = scmp.ge.s32.totalorder %s2081_s20, 1 }
   0xc   : > { %p2195_p6 = por %p148_p3, %p53_p0  ;;  %p155_p7 = scmp.lt.s32.totalorder %s2081_s20, 3 }
   0xd   : > { %s2575_s25 = scalar_select %p2190_p4, 1, 0 }
   0xe   : > { %s2576_s26 = scalar_select %p2195_p6, 1, 0 }
   0xf   : > { %p2200_p8 = pnand %p1524_p5, %p155_p7  ;;  %s2083_s28 = smov [#allocation7]  }
  0x10   : > { %s167_s29 = sshll.u32 %s2083_s28, 4  ;;  %s2084_s5 = smov [#allocation9]   ;;  %s2204_s29 = int_to_ptr.vmem [resolvable:$true] %s167_s29 }
  0x11   : > { %p1753_p9 = pneg %p2200_p8  ;;  %s180_s6 = sshll.u32 %s2084_s5, 4  ;;  %s2215_s6 = int_to_ptr.vmem [resolvable:$true] %s180_s6 }
  0x12   : > { %s1909_s9 = scalar_lea.hbm %s2565_s1, 256 }
  0x13   : > { %p2211_p11 = pnand %p1753_p9, %p2180_p1  ;;  %p1910_p12 = scmp.ne.s32.totalorder %s2565_s1, %s1909_s9 }
  0x14   : > { %p1916_p5 = scmp.lt.u32.totalorder %s1909_s9, %s2565_s1 }
  0x15   : > { %p1911_p13 = pneg %p2211_p11 }
  0x17   : > { %p1912_p0 = pnand %p1911_p13, %p1910_p12 }
  0x19   : > { %p1913_p3 = pneg %p1912_p0 }
  0x1b   : > { %p1918_p7 = pnand %p1916_p5, %p1913_p3 }
  0x1d   : > { %1921 = shalt.err (!%p1918_p7)
}
  0x1e   : > { %s1922_s14 = scalar_lea.vmem %s2204_s29, 256  ;;  %p1930_p1 = scmp.lt.s32.totalorder %s2204_s29, %s2204_s29 }
  0x1f   : > { %p1923_p9 = scmp.ne.s32.totalorder %s2204_s29, %s1922_s14  ;;  %p1931_p12 = scmp.lt.s32.totalorder %s1922_s14, %s1922_s14 }
  0x21   : > { %p1925_p10 = pnand %p1923_p9, %p1911_p13  ;;  %p1932_p0 = por %p1931_p12, %p1930_p1 }
  0x23   : > { %p1926_p6 = pneg %p1925_p10 }
  0x25   : > { %p1933_p4 = pnand %p1932_p0, %p1926_p6 }
  0x27   : > { %1936 = shalt.err (!%p1933_p4)
}
  0x28   : > { %s2085_s21 = smov 64   ;;  %s2086_s22 = smov 4  }
  0x29   : > { %1756 = dma.hbm_to_vmem [thread:$0]  (!%p2211_p11), %s2565_s1, 256, %s2204_s29, [#allocation8], %s2085_s21, %s2085_s21, %s2086_s22  }
  0x2a   : > { %s1937_s9 = scalar_lea.hbm %s2566_s2, 256 }
  0x2b   : > { %p1938_p1 = scmp.ne.s32.totalorder %s2566_s2, %s1937_s9  ;;  %p1944_p10 = scmp.lt.u32.totalorder %s1937_s9, %s2566_s2 }
  0x2d   : > { %p1940_p4 = pnand %p1938_p1, %p1911_p13 }
  0x2f   : > { %p1941_p6 = pneg %p1940_p4 }
  0x31   : > { %p1946_p3 = pnand %p1944_p10, %p1941_p6 }
  0x33   : > { %1949 = shalt.err (!%p1946_p3)
}
  0x34   : > { %s1950_s29 = scalar_lea.vmem %s2215_s6, 256  ;;  %p1958_p12 = scmp.lt.s32.totalorder %s2215_s6, %s2215_s6 }
  0x35   : > { %p1951_p5 = scmp.ne.s32.totalorder %s2215_s6, %s1950_s29  ;;  %p1959_p0 = scmp.lt.s32.totalorder %s1950_s29, %s1950_s29 }
  0x37   : > { %p1953_p7 = pnand %p1951_p5, %p1911_p13  ;;  %p1960_p1 = por %p1959_p0, %p1958_p12 }
  0x39   : > { %p1954_p9 = pneg %p1953_p7 }
  0x3b   : > { %p1961_p4 = pnand %p1960_p1, %p1954_p9 }
  0x3d   : > { %1964 = shalt.err (!%p1961_p4)
}
  0x3e   : > { %1759 = dma.hbm_to_vmem [thread:$0]  (!%p2211_p11), %s2566_s2, 256, %s2215_s6, [#allocation8], %s2085_s21, %s2085_s21, %s2086_s22  }
  0x3f   : > { %s33_s5 = sadd.s32 1, %s2077_s19  ;;  %s40_s7 = sadd.s32 1, %s2069_s17 }
  0x40   : > { %p35_p13 = scmp.ge.s32.totalorder %s33_s5, 2  ;;  %p47_p6 = scmp.ne.s32.totalorder %s2069_s17, %s2065_s16 }
  0x41   : > { %p48_p10 = scmp.eq.s32.totalorder %s2081_s20, 0  ;;  %p1770_p3 = scmp.lt.s32.totalorder %s2081_s20, 2 }
  0x42   : > { %s2592_s5 = smov (%p35_p13, %s33_s5), 0  ;;  %p2279_p7 = por %p2184_p2, %p47_p6 }
  0x43   : > { %p49_p5 = por %p48_p10, %p47_p6  ;;  %s37_s8 = ssub.s32 %s2077_s19, %s2592_s5 }
  0x44   : > { %s2579_s30 = scalar_select %p2279_p7, 1, 0 }
  0x45   : > { %s197_s9 = sand.u32 1, %s2069_s17   ;;  %p38_p9 = scmp.eq.s32.totalorder %s37_s8, 0 }
  0x46   : > { %s1528_s6 = sshll.u32 %s197_s9, 2  ;;  %s1529_s21 = sshll.u32 %s2077_s19, 6 }
  0x47   : > { %s2288_s22 = scalar_select %p38_p9, %s2069_s17, %s40_s7  }
  0x48   : > { %s2293_s12 = scalar_lea.hbm %s2564_s0, %s1529_s21  ;;  %s201_s24 = scalar_lea.vmem [#allocation4], %s1528_s6 }
  0x49   : > { %s208_s13 = sshll.u32 %s201_s24, 4  ;;  %p2297_p2 = pnand %p1770_p3, %p49_p5  ;;  %s2301_s13 = int_to_ptr.vmem [resolvable:$true] %s208_s13 }
  0x4a   : > { %s198_s14 = scalar_lea.sflag [#allocation5], %s197_s9  ;;  %s1965_s28 = scalar_lea.hbm %s2293_s12, 64 }
  0x4b   : > { %p1966_p11 = scmp.ne.s32.totalorder %s2293_s12, %s1965_s28  ;;  %p1967_p12 = pneg %p2297_p2 }
  0x4c   : > { %s1970_s6 = scalar_lea.hbm %s2564_s0, 128  ;;  %p1971_p4 = scmp.lt.u32.totalorder %s2293_s12, %s2564_s0 }
  0x4d   : > { %p1968_p0 = pnand %p1967_p12, %p1966_p11  ;;  %p1972_p13 = scmp.lt.u32.totalorder %s1970_s6, %s1965_s28 }
  0x4e   : > { %p1974_p10 = scmp.lt.u32.totalorder %s1965_s28, %s2293_s12 }
  0x4f   : > { %p1969_p1 = pneg %p1968_p0  ;;  %p1973_p6 = por %p1972_p13, %p1971_p4 }
  0x51   : > { %p1975_p3 = por %p1974_p10, %p1973_p6 }
  0x53   : > { %p1976_p5 = pnand %p1975_p3, %p1969_p1 }
  0x55   : > { %1979 = shalt.err (!%p1976_p5)
}
  0x56   : > { %s1980_s9 = scalar_lea.vmem %s2301_s13, 64  ;;  %s2087_s11 = smov [#allocation4]  }
  0x57   : > { %p1981_p9 = scmp.ne.s32.totalorder %s2301_s13, %s1980_s9  ;;  %s1985_s24 = sshll.u32 %s2087_s11, 4  ;;  %s1986_s24 = int_to_ptr.vmem [resolvable:$false] %s1985_s24 }
  0x58   : > { %s1987_s7 = scalar_lea.vmem %s1986_s24, 128  ;;  %p1988_p7 = scmp.lt.s32.totalorder %s2301_s13, %s1986_s24 }
  0x59   : > { %p1983_p11 = pnand %p1981_p9, %p1967_p12  ;;  %p1989_p4 = scmp.lt.s32.totalorder %s1987_s7, %s1980_s9 }
  0x5b   : > { %p1984_p0 = pneg %p1983_p11  ;;  %p1990_p13 = por %p1989_p4, %p1988_p7 }
  0x5d   : > { %p1991_p6 = pnand %p1990_p13, %p1984_p0 }
  0x5f   : > { %1994 = shalt.err (!%p1991_p6)
}
  0x60   : > { %1763 = dma.hbm_to_vmem [thread:$0]  (!%p2297_p2), %s2293_s12, 64, %s2301_s13, %s198_s14  }
  0x61   : > { %217 = sbr.rel (%p2200_p8) target bundleno = 1488 (0x5d0), region = 36  ;;  %s2331_s28 = sand.u32 (!%p2200_p8), 1, %s2065_s16  }
  0x62   : > { %s1531_s8 = sshll.u32 (!%p2200_p8), %s2331_s28, 2  ;;  %s220_s6 = scalar_lea.sflag (!%p2200_p8), [#allocation5], %s2331_s28 }
  0x63   : > { %s223_s21 = scalar_lea.vmem (!%p2200_p8), [#allocation4], %s1531_s8  ;;  %p2581_p7 = scmp.ne.s32.totalorder (!%p2200_p8), %s2575_s25, 0 }
  0x68   : > { %2048 = dma.done.wait (%p2581_p7), %s220_s6, 64  }
  0x69   : > { %2050 = vsyncadd (%p2581_p7), %s220_s6, 4294967232  ;;  %p2582_p12 = scmp.ne.s32.totalorder %s2573_s23, 0 }
  0x6b   : > { %2052 = dma.done.wait (%p2582_p12), [#allocation8], 512  }
  0x6c   : > { %2054 = vsyncadd (%p2582_p12), [#allocation8], 4294966784  ;;  %v2088_v0 = vmov 0.0   ;;  %vm2089_vm0 = vmmov 0   ;;  %v1858_v1 = vld [vmem:[#allocation7] sm:$0xff]   ;;  %v1859_v2 = vld [vmem:[#allocation7 + $0x8] sm:$0xff]  }
  0x6d   : > { %1629 = vmatprep.subr.bf16.mxu0 %v2088_v0  ;;  %1633 = vmatprep.mubr.msk.bf16.mxu0 %vm2089_vm0, %v2088_v0  ;;  %v261_v3 = vld [vmem:[%s223_s21] sm:$0xf]  ;;  %vm278_vm1 = vcmask 261120   ;;  %vm323_vm2 = vcmask 781312   ;;  %s2090_s23 = smov 124   ;;  %s2091_s25 = smov 96  }
  0x6e   : > { %1637 = vmatprep.subr.bf16.mxu1 %v2088_v0  ;;  %1639 = vmatprep.mubr.msk.bf16.mxu1 %vm2089_vm0, %v2088_v0  ;;  %s2092_s27 = smov 88   ;;  %s2093_s12 = smov 92   ;;  %vm337_vm3 = vcmask 31744   ;;  %vm400_vm4 = vcmask 1043456   ;;  %vm384_vm5 = vcmask 64512   ;;  %vm447_vm6 = vcmask 27648  }
  0x6f   : > { %1630 = vmatpush3.bf16.msra.mxu0 %v1858_v1  ;;  %s2094_s13 = smov 84   ;;  %s2095_s29 = smov 120   ;;  %vm574_vm7 = vcmask 60448   ;;  %vm701_vm8 = vcmask 93248   ;;  %vm828_vm9 = vcmask 126048   ;;  %vm955_vm10 = vcmask 158848  }
  0x70   : > { %1631 = vmatprep.subr.bf16.mxu0 %v2088_v0  ;;  %s2096_s14 = smov 80   ;;  %s2097_s10 = smov 116   ;;  %vm1082_vm11 = vcmask 191648   ;;  %vm1209_vm12 = vcmask 224448   ;;  %vm1336_vm13 = vcmask 257248  }
  0x71   : > { %s2098_s9 = smov 76   ;;  %s2099_s11 = smov 112  }
  0x72   : > { %s2100_s24 = smov 72   ;;  %s2101_s7 = smov 108  }
  0x73   : > { %1632 = vmatpush3.bf16.msra.mxu0 %v1859_v2  ;;  %s2102_s8 = smov 68   ;;  %s2103_s6 = smov 104  }
  0x74   : > { %1643 = vmatprep.subr.bf16.mxu0 %v2088_v0  ;;  %s2104_s21 = smov 60   ;;  %p2583_p2 = scmp.ne.s32.totalorder %s2579_s30, 0 }
  0x76   : > { %1634 = vmatmul.mubr.msk.bf16.vlgmr.msra.gmra.mrb[0].mxu0 %vm278_vm1, %v261_v3 }
  0x77   : > { %1645 = vmatprep.mubr.msk.bf16.mxu0 %vm2089_vm0, %v2088_v0 }
 0x149   : > { %v316_v4 = vpop.f32.mrb[0].mxu0 }
 0x14a   : > { %v322_v5 = vpack.c.bf16 %v316_v4, %v316_v4  ;;  %v1635_v6 = vpop.f32.mrb[1].mxu0 }
 0x14b   : > { %v319_v7 = vpop.f32.mrb[2].mxu0 }
 0x14c   : > { %324 = vst.msk [vmem:[#allocation2] sm:$0xf] %vm323_vm2, %v322_v5  ;;  %v1636_v8 = vpop.f32.mrb[3].mxu0 }
 0x153   : > { %v1860_v9 = vld [vmem:[#allocation2] ss:$0 sps:$4 sm:$0xff]  }
 0x154   : > { %v1861_v10 = vld [vmem:[#allocation2] ss:$0 sps:$4 sm:$0xff]   ;;  %454 = vrot.lane.b32.xlu1 %v1860_v9, %s2090_s23  ;;  %s2105_s23 = smov 100  }
 0x155   : > { %335 = vrot.lane.b32.xlu0 %v1861_v10, %s2091_s25  ;;  %v2354_v11 = vld [vmem:[#allocation2] ss:$0 sps:$4 sm:$0xff]   ;;  %s2106_s25 = smov 64  }
 0x156   : > { %v1863_v12 = vld [vmem:[#allocation2] ss:$0 sps:$4 sm:$0xff]  }
 0x157   : > { %v2357_v13 = vld [vmem:[#allocation2] ss:$0 sps:$4 sm:$0xff]  }
 0x158   : > { %586 = vrot.lane.b32.xlu1 %v2354_v11, %s2092_s27  ;;  %v1865_v14 = vld [vmem:[#allocation2] ss:$0 sps:$4 sm:$0xff]   ;;  %s2107_s27 = smov 56  }
 0x159   : > { %459 = vrot.lane.b32.xlu0 %v1863_v12, %s2093_s12  ;;  %v2360_v15 = vld [vmem:[#allocation2] ss:$0 sps:$4 sm:$0xff]   ;;  %s2108_s12 = smov 52  }
 0x15a   : > { %v1867_v16 = vld [vmem:[#allocation2] ss:$0 sps:$4 sm:$0xff]  }
 0x15b   : > { %v2363_v17 = vld [vmem:[#allocation2] ss:$0 sps:$4 sm:$0xff]  }
 0x15c   : > { %713 = vrot.lane.b32.xlu1 %v2357_v13, %s2094_s13  ;;  %v1869_v18 = vld [vmem:[#allocation2] ss:$0 sps:$4 sm:$0xff]   ;;  %s2109_s13 = smov 48  }
 0x15d   : > { %581 = vrot.lane.b32.xlu0 %v1865_v14, %s2095_s29  ;;  %v2366_v19 = vld [vmem:[#allocation2] ss:$0 sps:$4 sm:$0xff]   ;;  %s2110_s29 = smov 44  }
 0x15e   : > { %v1871_v20 = vld [vmem:[#allocation2] ss:$0 sps:$4 sm:$0xff]  }
 0x15f   : > { %v2369_v21 = vld [vmem:[#allocation2] ss:$0 sps:$4 sm:$0xff]  }
 0x160   : > { %840 = vrot.lane.b32.xlu1 %v2360_v15, %s2096_s14  ;;  %v1873_v22 = vld [vmem:[#allocation2] ss:$0 sps:$4 sm:$0xff]   ;;  %s2111_s14 = smov 40  }
 0x161   : > { %708 = vrot.lane.b32.xlu0 %v1867_v16, %s2097_s10  ;;  %v1874_v23 = vld [vmem:[#allocation2] ss:$0 sps:$4 sm:$0xff]   ;;  %s2112_s10 = smov 36  }
 0x162   : > { %v330_v29 = vld [vmem:[#allocation2] sm:$0xf] }
 0x164   : > { %967 = vrot.lane.b32.xlu1 %v2363_v17, %s2098_s9  ;;  %s2113_s9 = smov 4  }
 0x165   : > { %835 = vrot.lane.b32.xlu0 %v1869_v18, %s2099_s11  ;;  %s2114_s11 = smov 8  }
 0x168   : > { %1094 = vrot.lane.b32.xlu1 %v2366_v19, %s2100_s24  ;;  %s2115_s24 = smov 12  }
 0x169   : > { %962 = vrot.lane.b32.xlu0 %v1871_v20, %s2101_s7  ;;  %s2116_s7 = smov 16  }
 0x16c   : > { %1221 = vrot.lane.b32.xlu1 %v2369_v21, %s2102_s8  ;;  %s2117_s8 = smov 20  }
 0x16d   : > { %1089 = vrot.lane.b32.xlu0 %v1873_v22, %s2103_s6  ;;  %s2118_s6 = smov 24  }
 0x170   : > { %517 = vrot.lane.b32.xlu1 %v1863_v12, %s2104_s21  ;;  %s2119_s21 = smov 28  }
 0x171   : > { %1216 = vrot.lane.b32.xlu0 %v1874_v23, %s2105_s23  ;;  %s1534_s23 = sshll.u32 %s2331_s28, 3 }
 0x175   : > { %395 = vrot.lane.b32.xlu0 %v1861_v10, %s2106_s25 }
 0x1c6   : > { %v455_v27 = vpop.permute.xlu1 %454 }
 0x1c7   : > { %v336_v24 = vpop.permute.xlu0 %335 }
 0x1c8   : > { %v342_v25 = vsel %vm337_vm3, %v336_v24, 0 }
 0x1c9   : > { %1638 = vmatpush3.bf16.xpose.msra.mxu1 %v342_v25 }
 0x1ca   : > { %1649 = vmatprep.subr.bf16.mxu1 %v2088_v0  ;;  %v587_v32 = vpop.permute.xlu1 %586 }
 0x1cb   : > { %v460_v26 = vpop.permute.xlu0 %459  ;;  %v592_v34 = vsel %vm337_vm3, %v587_v32, 0 }
 0x1cc   : > { %v465_v30 = vsel %vm337_vm3, %v460_v26, 0 }
 0x1ce   : > { %v714_v36 = vpop.permute.xlu1 %713 }
 0x1cf   : > { %v582_v28 = vpop.permute.xlu0 %581  ;;  %v719_v38 = vsel %vm337_vm3, %v714_v36, 0 }
 0x1d0   : > { %1640 = vmatmul.mubr.msk.bf16.vlgmr.msra.gmra.mrb[0].mxu1 %vm337_vm3, %v330_v29 }
 0x1d1   : > { %1650 = vmatpush3.bf16.xpose.msra.mxu1 %v465_v30  ;;  %1651 = vmatprep.mubr.msk.bf16.mxu1 %vm2089_vm0, %v2088_v0 }
 0x1d2   : > { %1661 = vmatprep.subr.bf16.mxu1 %v2088_v0  ;;  %v841_v40 = vpop.permute.xlu1 %840 }
 0x1d3   : > { %v709_v31 = vpop.permute.xlu0 %708  ;;  %v846_v42 = vsel %vm337_vm3, %v841_v40, 0 }
 0x1d6   : > { %v968_v44 = vpop.permute.xlu1 %967 }
 0x1d7   : > { %v836_v33 = vpop.permute.xlu0 %835  ;;  %v973_v45 = vsel %vm337_vm3, %v968_v44, 0 }
 0x1d8   : > { %1652 = vmatmul.mubr.msk.bf16.vlgmr.msra.gmra.mrb[4].mxu1 %vm337_vm3, %v455_v27 }
 0x1d9   : > { %1662 = vmatpush3.bf16.xpose.msra.mxu1 %v592_v34  ;;  %1663 = vmatprep.mubr.msk.bf16.mxu1 %vm2089_vm0, %v2088_v0 }
 0x1da   : > { %1673 = vmatprep.subr.bf16.mxu1 %v2088_v0  ;;  %v1095_v46 = vpop.permute.xlu1 %1094 }
 0x1db   : > { %v963_v35 = vpop.permute.xlu0 %962  ;;  %v1100_v47 = vsel %vm337_vm3, %v1095_v46, 0 }
 0x1de   : > { %v1222_v48 = vpop.permute.xlu1 %1221 }
 0x1df   : > { %v1090_v37 = vpop.permute.xlu0 %1089  ;;  %v1227_v49 = vsel %vm337_vm3, %v1222_v48, 0 }
 0x1e0   : > { %1664 = vmatmul.mubr.msk.bf16.vlgmr.msra.gmra.mrb[8].mxu1 %vm337_vm3, %v582_v28 }
 0x1e1   : > { %1674 = vmatpush3.bf16.xpose.msra.mxu1 %v719_v38  ;;  %1675 = vmatprep.mubr.msk.bf16.mxu1 %vm2089_vm0, %v2088_v0 }
 0x1e2   : > { %1685 = vmatprep.subr.bf16.mxu1 %v2088_v0 }
 0x1e3   : > { %v1217_v39 = vpop.permute.xlu0 %1216 }
 0x1e7   : > { %v396_v41 = vpop.permute.xlu0 %395 }
 0x1e8   : > { %v402_v43 = vsel %vm400_vm4, %v396_v41, 0  ;;  %1676 = vmatmul.mubr.msk.bf16.vlgmr.msra.gmra.mrb[12].mxu1 %vm337_vm3, %v709_v31  ;;  %v518_v31 = vpop.permute.xlu1 %517 }
 0x1e9   : > { %1644 = vmatpush3.bf16.msra.mxu0 %v402_v43  ;;  %1686 = vmatpush3.bf16.xpose.msra.mxu1 %v846_v42 }
 0x1ea   : > { %1687 = vmatprep.mubr.msk.bf16.mxu1 %vm2089_vm0, %v2088_v0  ;;  %1697 = vmatprep.subr.bf16.mxu1 %v2088_v0 }
 0x1eb   : > { %1655 = vmatprep.subr.bf16.mxu0 %v2088_v0 }
 0x1f0   : > { %1688 = vmatmul.mubr.msk.bf16.vlgmr.msra.gmra.mrb[16].mxu1 %vm337_vm3, %v836_v33 }
 0x1f1   : > { %1698 = vmatpush3.bf16.xpose.msra.mxu1 %v973_v45  ;;  %1699 = vmatprep.mubr.msk.bf16.mxu1 %vm2089_vm0, %v2088_v0 }
 0x1f2   : > { %1709 = vmatprep.subr.bf16.mxu1 %v2088_v0 }
 0x1f8   : > { %1700 = vmatmul.mubr.msk.bf16.vlgmr.msra.gmra.mrb[20].mxu1 %vm337_vm3, %v963_v35 }
 0x1f9   : > { %1710 = vmatpush3.bf16.xpose.msra.mxu1 %v1100_v47  ;;  %1711 = vmatprep.mubr.msk.bf16.mxu1 %vm2089_vm0, %v2088_v0 }
 0x1fa   : > { %1721 = vmatprep.subr.bf16.mxu1 %v2088_v0 }
 0x200   : > { %1712 = vmatmul.mubr.msk.bf16.vlgmr.msra.gmra.mrb[24].mxu1 %vm337_vm3, %v1090_v37 }
 0x201   : > { %1722 = vmatpush3.bf16.xpose.msra.mxu1 %v1227_v49  ;;  %1723 = vmatprep.mubr.msk.bf16.mxu1 %vm2089_vm0, %v2088_v0 }
 0x202   : > { %1733 = vmatprep.subr.bf16.mxu1 %v2088_v0 }
 0x208   : > { %1724 = vmatmul.mubr.msk.bf16.vlgmr.msra.gmra.mrb[28].mxu1 %vm337_vm3, %v1217_v39 }
 0x209   : > { %1737 = vmatprep.mubr.msk.bf16.mxu1 %vm2089_vm0, %v2088_v0 }
 0x2a3   : > { %v2414_v50 = vpop.f32.mrb[0].mxu1 }
 0x2a4   : > { %v1641_v51 = vpop.f32.mrb[1].mxu1  ;;  %v385_v52 = vsel %vm384_vm5, %v2414_v50, -inf }
 0x2a5   : > { %386 = vmax.xlane.f32.xlu1 %v385_v52  ;;  %v381_v53 = vpop.f32.mrb[2].mxu1 }
 0x2a6   : > { %v1642_v54 = vpop.f32.mrb[3].mxu1 }
 0x2ab   : > { %v501_v55 = vpop.f32.mrb[4].mxu1 }
 0x2ac   : > { %v1653_v56 = vpop.f32.mrb[5].mxu1  ;;  %v507_v57 = vsel %vm384_vm5, %v501_v55, -inf }
 0x2ad   : > { %508 = vmax.xlane.f32.xlu0 %v507_v57  ;;  %v504_v58 = vpop.f32.mrb[6].mxu1 }
 0x2ae   : > { %v1654_v59 = vpop.f32.mrb[7].mxu1 }
 0x2b3   : > { %v2419_v60 = vpop.f32.mrb[8].mxu1 }
 0x2b4   : > { %v1665_v61 = vpop.f32.mrb[9].mxu1  ;;  %v634_v62 = vsel %vm384_vm5, %v2419_v60, -inf }
 0x2b5   : > { %635 = vmax.xlane.f32.xlu0 %v634_v62  ;;  %v631_v63 = vpop.f32.mrb[10].mxu1 }
 0x2b6   : > { %644 = vrot.lane.b32.xlu1 %v2354_v11, %s2107_s27  ;;  %v1666_v1 = vpop.f32.mrb[11].mxu1 }
 0x2bb   : > { %v2424_v2 = vpop.f32.mrb[12].mxu1 }
 0x2bc   : > { %v1677_v3 = vpop.f32.mrb[13].mxu1  ;;  %v761_v23 = vsel %vm384_vm5, %v2424_v2, -inf }
 0x2bd   : > { %v758_v4 = vpop.f32.mrb[14].mxu1 }
 0x2be   : > { %v1678_v5 = vpop.f32.mrb[15].mxu1 }
 0x2c3   : > { %v2426_v6 = vpop.f32.mrb[16].mxu1 }
 0x2c4   : > { %v1689_v7 = vpop.f32.mrb[17].mxu1 }
 0x2c5   : > { %v885_v8 = vpop.f32.mrb[18].mxu1 }
 0x2c6   : > { %v1690_v9 = vpop.f32.mrb[19].mxu1 }
 0x2cb   : > { %771 = vrot.lane.b32.xlu0 %v2357_v13, %s2108_s12  ;;  %v2429_v10 = vpop.f32.mrb[20].mxu1  ;;  %v888_v13 = vsel %vm384_vm5, %v2426_v6, -inf  ;;  %s1581_s12 = sshll.u32 %s2073_s18, 7  ;;  %s1408_s18 = scalar_lea.sflag [#allocation6], %s2331_s28 }
 0x2cc   : > { %v1701_v12 = vpop.f32.mrb[21].mxu1  ;;  %v1015_v30 = vsel %vm384_vm5, %v2429_v10, -inf }
 0x2cd   : > { %v1012_v14 = vpop.f32.mrb[22].mxu1 }
 0x2ce   : > { %v1702_v16 = vpop.f32.mrb[23].mxu1 }
 0x2d3   : > { %v2431_v11 = vpop.f32.mrb[24].mxu1 }
 0x2d4   : > { %v1713_v18 = vpop.f32.mrb[25].mxu1  ;;  %v1142_v28 = vsel %vm384_vm5, %v2431_v11, -inf }
 0x2d5   : > { %v1139_v20 = vpop.f32.mrb[26].mxu1 }
 0x2d6   : > { %v1714_v22 = vpop.f32.mrb[27].mxu1 }
 0x2da   : > { %762 = vmax.xlane.f32.xlu1 %v761_v23 }
 0x2db   : > { %v2435_v24 = vpop.f32.mrb[28].mxu1 }
 0x2dc   : > { %v1725_v25 = vpop.f32.mrb[29].mxu1  ;;  %v1269_v29 = vsel %vm384_vm5, %v2435_v24, -inf }
 0x2dd   : > { %v1266_v26 = vpop.f32.mrb[30].mxu1 }
 0x2de   : > { %889 = vmax.xlane.f32.xlu1 %v888_v13  ;;  %v1726_v27 = vpop.f32.mrb[31].mxu1 }
 0x2e2   : > { %1143 = vmax.xlane.f32.xlu1 %v1142_v28 }
 0x2e6   : > { %1270 = vmax.xlane.f32.xlu1 %v1269_v29 }
 0x2ea   : > { %1016 = vmax.xlane.f32.xlu0 %v1015_v30 }
 0x2f7   : > { %898 = vrot.lane.b32.xlu1 %v2360_v15, %s2109_s13  ;;  %s255_s13 = scalar_lea.vmem [#allocation10], %s1534_s23 }
 0x300   : > { %1025 = vrot.lane.b32.xlu0 %v2363_v17, %s2110_s29  ;;  %s1422_s29 = sshll.u32 %s255_s13, 4  ;;  %s2516_s29 = int_to_ptr.vmem [resolvable:$true] %s1422_s29 }
 0x304   : > { %1152 = vrot.lane.b32.xlu0 %v2366_v19, %s2111_s14 }
 0x308   : > { %1279 = vrot.lane.b32.xlu0 %v2369_v21, %s2112_s10  ;;  %v523_v21 = vsel %vm400_vm4, %v518_v31, 0 }
 0x332   : > { %v387_v32 = vpop.xlane.xlu1 %386 }
 0x333   : > { %v388_v33 = vsub.f32 %v2414_v50, %v387_v32 }
 0x335   : > { %v389_v34 = vmul.f32 1.442695, %v388_v33 }
 0x336   : > { %v645_v41 = vpop.permute.xlu1 %644 }
 0x337   : > { %1877 = vpow2.f32 %v389_v34  ;;  %v650_v44 = vsel %vm400_vm4, %v645_v41, 0 }
 0x33a   : > { %v509_v35 = vpop.xlane.xlu0 %508 }
 0x33b   : > { %v510_v36 = vsub.f32 %v501_v55, %v509_v35 }
 0x33d   : > { %v511_v37 = vmul.f32 1.442695, %v510_v36 }
 0x33f   : > { %1879 = vpow2.f32 %v511_v37 }
 0x341   : > { %v2450_v15 = vpop.eup %1877 }
 0x342   : > { %v636_v38 = vpop.xlane.xlu0 %635  ;;  %v394_v17 = vpack.c.bf16 %v2450_v15, %v2450_v15 }
 0x343   : > { %v637_v19 = vsub.f32 %v2419_v60, %v636_v38 }
 0x344   : > { %1646 = vmatmul.mubr.msk.bf16.vlgmr.msra.gmra.mrb[4].mxu0 %vm384_vm5, %v394_v17 }
 0x345   : > { %v638_v39 = vmul.f32 1.442695, %v637_v19  ;;  %1656 = vmatpush3.bf16.msra.mxu0 %v523_v21  ;;  %1657 = vmatprep.mubr.msk.bf16.mxu0 %vm2089_vm0, %v2088_v0 }
 0x346   : > { %1667 = vmatprep.subr.bf16.mxu0 %v2088_v0  ;;  %v772_v46 = vpop.permute.xlu0 %771 }
 0x347   : > { %1881 = vpow2.f32 %v638_v39  ;;  %v777_v49 = vsel %vm400_vm4, %v772_v46, 0 }
 0x349   : > { %v1880_v40 = vpop.eup %1879 }
 0x34a   : > { %v513_v42 = vsel %vm384_vm5, %v1880_v40, 0.0  ;;  %v516_v43 = vpack.c.bf16 %v1880_v40, %v1880_v40 }
 0x34b   : > { %514 = vadd.xlane.f32.xlu1 %v513_v42 }
 0x34c   : > { %1658 = vmatmul.mubr.msk.bf16.vlgmr.msra.gmra.mrb[8].mxu0 %vm384_vm5, %v516_v43 }
 0x34d   : > { %1668 = vmatpush3.bf16.msra.mxu0 %v650_v44  ;;  %1669 = vmatprep.mubr.msk.bf16.mxu0 %vm2089_vm0, %v2088_v0 }
 0x34e   : > { %1679 = vmatprep.subr.bf16.mxu0 %v2088_v0 }
 0x351   : > { %v1882_v45 = vpop.eup %1881 }
 0x352   : > { %v640_v47 = vsel %vm384_vm5, %v1882_v45, 0.0  ;;  %v643_v48 = vpack.c.bf16 %v1882_v45, %v1882_v45 }
 0x353   : > { %641 = vadd.xlane.f32.xlu0 %v640_v47 }
 0x354   : > { %1670 = vmatmul.mubr.msk.bf16.vlgmr.msra.gmra.mrb[12].mxu0 %vm384_vm5, %v643_v48 }
 0x355   : > { %1680 = vmatpush3.bf16.msra.mxu0 %v777_v49  ;;  %1681 = vmatprep.mubr.msk.bf16.mxu0 %vm2089_vm0, %v2088_v0 }
 0x356   : > { %1691 = vmatprep.subr.bf16.mxu0 %v2088_v0 }
 0x367   : > { %v763_v50 = vpop.xlane.xlu1 %762 }
 0x368   : > { %v764_v51 = vsub.f32 %v2424_v2, %v763_v50 }
 0x36a   : > { %v765_v52 = vmul.f32 1.442695, %v764_v51 }
 0x36b   : > { %v890_v53 = vpop.xlane.xlu1 %889 }
 0x36c   : > { %1883 = vpow2.f32 %v765_v52  ;;  %v891_v54 = vsub.f32 %v2426_v6, %v890_v53 }
 0x36e   : > { %v892_v55 = vmul.f32 1.442695, %v891_v54 }
 0x36f   : > { %v1144_v56 = vpop.xlane.xlu1 %1143 }
 0x370   : > { %1885 = vpow2.f32 %v892_v55  ;;  %v1145_v57 = vsub.f32 %v2431_v11, %v1144_v56  ;;  %v391_v11 = vsel %vm384_vm5, %v2450_v15, 0.0 }
 0x372   : > { %v1146_v58 = vmul.f32 1.442695, %v1145_v57 }
 0x373   : > { %v1271_v59 = vpop.xlane.xlu1 %1270 }
 0x374   : > { %1887 = vpow2.f32 %v1146_v58  ;;  %v1272_v61 = vsub.f32 %v2435_v24, %v1271_v59 }
 0x376   : > { %v1884_v60 = vpop.eup %1883  ;;  %v1273_v6 = vmul.f32 1.442695, %v1272_v61 }
 0x377   : > { %v1017_v62 = vpop.xlane.xlu0 %1016  ;;  %v899_v63 = vpop.permute.xlu1 %898  ;;  %v767_v1 = vsel %vm384_vm5, %v1884_v60, 0.0  ;;  %v770_v2 = vpack.c.bf16 %v1884_v60, %v1884_v60 }
 0x378   : > { %v1018_v3 = vsub.f32 %v2429_v10, %v1017_v62  ;;  %v904_v4 = vsel %vm400_vm4, %v899_v63, 0  ;;  %768 = vadd.xlane.f32.xlu0 %v767_v1 }
 0x379   : > { %1682 = vmatmul.mubr.msk.bf16.vlgmr.msra.gmra.mrb[16].mxu0 %vm384_vm5, %v770_v2 }
 0x37a   : > { %v1886_v5 = vpop.eup %1885  ;;  %v1019_v7 = vmul.f32 1.442695, %v1018_v3  ;;  %1692 = vmatpush3.bf16.msra.mxu0 %v904_v4  ;;  %1693 = vmatprep.mubr.msk.bf16.mxu0 %vm2089_vm0, %v2088_v0 }
 0x37b   : > { %v894_v8 = vsel %vm384_vm5, %v1886_v5, 0.0  ;;  %1703 = vmatprep.subr.bf16.mxu0 %v2088_v0  ;;  %v1026_v10 = vpop.permute.xlu0 %1025  ;;  %v897_v14 = vpack.c.bf16 %v1886_v5, %v1886_v5 }
 0x37c   : > { %1889 = vpow2.f32 %v1019_v7  ;;  %895 = vadd.xlane.f32.xlu1 %v894_v8  ;;  %v1031_v16 = vsel %vm400_vm4, %v1026_v10, 0 }
 0x37d   : > { %1891 = vpow2.f32 %v1273_v6 }
 0x37e   : > { %v1888_v9 = vpop.eup %1887 }
 0x37f   : > { %v1148_v12 = vsel %vm384_vm5, %v1888_v9, 0.0  ;;  %v1153_v20 = vpop.permute.xlu0 %1152  ;;  %v1151_v27 = vpack.c.bf16 %v1888_v9, %v1888_v9 }
 0x380   : > { %1149 = vadd.xlane.f32.xlu1 %v1148_v12  ;;  %v1158_v25 = vsel %vm400_vm4, %v1153_v20, 0 }
 0x381   : > { %1694 = vmatmul.mubr.msk.bf16.vlgmr.msra.gmra.mrb[20].mxu0 %vm384_vm5, %v897_v14 }
 0x382   : > { %1704 = vmatpush3.bf16.msra.mxu0 %v1031_v16  ;;  %1705 = vmatprep.mubr.msk.bf16.mxu0 %vm2089_vm0, %v2088_v0 }
 0x383   : > { %1715 = vmatprep.subr.bf16.mxu0 %v2088_v0  ;;  %v1280_v13 = vpop.permute.xlu0 %1279 }
 0x384   : > { %392 = vadd.xlane.f32.xlu1 %v391_v11  ;;  %v1285_v28 = vsel %vm400_vm4, %v1280_v13, 0 }
 0x386   : > { %v1890_v18 = vpop.eup %1889 }
 0x387   : > { %v1021_v22 = vsel %vm384_vm5, %v1890_v18, 0.0  ;;  %v1024_v23 = vpack.c.bf16 %v1890_v18, %v1890_v18  ;;  %v1892_v24 = vpop.eup %1891  ;;  %v1875_v18 = vld [vmem:[#allocation9] sm:$0xff]  }
 0x388   : > { %1022 = vadd.xlane.f32.xlu0 %v1021_v22  ;;  %v1275_v26 = vsel %vm384_vm5, %v1892_v24, 0.0  ;;  %v1278_v29 = vpack.c.bf16 %v1892_v24, %v1892_v24  ;;  %1734 = vmatpush3.bf16.msra.mxu1 %v1875_v18  ;;  %v1876_v24 = vld [vmem:[#allocation9 + $0x8] sm:$0xff]  }
 0x389   : > { %1706 = vmatmul.mubr.msk.bf16.vlgmr.msra.gmra.mrb[24].mxu0 %vm384_vm5, %v1024_v23  ;;  %1735 = vmatprep.subr.bf16.mxu1 %v2088_v0 }
 0x38a   : > { %1716 = vmatpush3.bf16.msra.mxu0 %v1158_v25  ;;  %1717 = vmatprep.mubr.msk.bf16.mxu0 %vm2089_vm0, %v2088_v0 }
 0x38b   : > { %1727 = vmatprep.subr.bf16.mxu0 %v2088_v0 }
 0x38c   : > { %1276 = vadd.xlane.f32.xlu0 %v1275_v26  ;;  %1736 = vmatpush3.bf16.msra.mxu1 %v1876_v24 }
 0x391   : > { %1718 = vmatmul.mubr.msk.bf16.vlgmr.msra.gmra.mrb[28].mxu0 %vm384_vm5, %v1151_v27 }
 0x392   : > { %1728 = vmatpush3.bf16.msra.mxu0 %v1285_v28  ;;  %1729 = vmatprep.mubr.msk.bf16.mxu0 %vm2089_vm0, %v2088_v0 }
 0x399   : > { %1730 = vmatmul.mubr.msk.bf16.vlgmr.msra.gmra.mrb[32].mxu0 %vm384_vm5, %v1278_v29 }
 0x3d8   : > { %v515_v30 = vpop.xlane.xlu1 %514 }
 0x3e0   : > { %v642_v37 = vpop.xlane.xlu0 %641 }
 0x405   : > { %v769_v52 = vpop.xlane.xlu0 %768 }
 0x409   : > { %v896_v31 = vpop.xlane.xlu1 %895 }
 0x40d   : > { %v1150_v32 = vpop.xlane.xlu1 %1149 }
 0x411   : > { %v393_v33 = vpop.xlane.xlu1 %392 }
 0x412   : > { %1893 = vrcp.f32 %v393_v33 }
 0x413   : > { %1895 = vrcp.f32 %v515_v30 }
 0x414   : > { %1897 = vrcp.f32 %v642_v37 }
 0x415   : > { %1899 = vrcp.f32 %v769_v52  ;;  %v1023_v58 = vpop.xlane.xlu0 %1022 }
 0x416   : > { %1901 = vrcp.f32 %v896_v31 }
 0x417   : > { %v438_v34 = vpop.f32.mrb[4].mxu0  ;;  %1903 = vrcp.f32 %v1023_v58 }
 0x418   : > { %v1647_v35 = vpop.f32.mrb[5].mxu0  ;;  %1905 = vrcp.f32 %v1150_v32 }
 0x419   : > { %v441_v36 = vpop.f32.mrb[6].mxu0  ;;  %v1277_v10 = vpop.xlane.xlu0 %1276 }
 0x41a   : > { %v1648_v15 = vpop.f32.mrb[7].mxu0  ;;  %1907 = vrcp.f32 %v1277_v10 }
 0x41c   : > { %v1894_v38 = vpop.eup %1893 }
 0x41d   : > { %v445_v17 = vmul.f32 %v1894_v38, %v438_v34  ;;  %v1896_v19 = vpop.eup %1895 }
 0x41e   : > { %v1898_v45 = vpop.eup %1897 }
 0x41f   : > { %v446_v21 = vpack.c.bf16 %v445_v17, %v445_v17  ;;  %v559_v39 = vpop.f32.mrb[8].mxu0  ;;  %v1900_v53 = vpop.eup %1899  ;;  %v1576_v17 = vld [vmem:[%s2567_s3] ss:$0 sm:$0xff] }
 0x420   : > { %v566_v40 = vmul.f32 %v1896_v19, %v559_v39  ;;  %v1659_v41 = vpop.f32.mrb[9].mxu0  ;;  %v1902_v61 = vpop.eup %1901 }
 0x421   : > { %448 = vst.msk [vmem:[#allocation3] sm:$0xf] %vm447_vm6, %v446_v21  ;;  %v562_v42 = vpop.f32.mrb[10].mxu0  ;;  %v1904_v5 = vpop.eup %1903 }
 0x422   : > { %v1584_v43 = vpack.c.bf16 %v566_v40, %v566_v40  ;;  %v1660_v44 = vpop.f32.mrb[11].mxu0  ;;  %v1906_v16 = vpop.eup %1905 }
 0x424   : > { %571 = vrot.lane.b32.xlu0 %v1584_v43, %s2113_s9  ;;  %v1908_v13 = vpop.eup %1907  ;;  %s2514_s9 = scalar_lea.hbm %s2568_s4, %s1581_s12 }
 0x427   : > { %v686_v46 = vpop.f32.mrb[12].mxu0 }
 0x428   : > { %v693_v47 = vmul.f32 %v1898_v45, %v686_v46  ;;  %v1671_v48 = vpop.f32.mrb[13].mxu0 }
 0x429   : > { %v689_v49 = vpop.f32.mrb[14].mxu0 }
 0x42a   : > { %v1585_v50 = vpack.c.bf16 %v693_v47, %v693_v47  ;;  %v1672_v51 = vpop.f32.mrb[15].mxu0 }
 0x42c   : > { %698 = vrot.lane.b32.xlu1 %v1585_v50, %s2114_s11  ;;  %s1995_s11 = scalar_lea.vmem %s2516_s29, 128 }
 0x42d   : > { %p1996_p8 = scmp.ne.s32.totalorder %s2516_s29, %s1995_s11 }
 0x42f   : > { %p1997_p1 = pnand %p1996_p8, %p2583_p2 }
 0x431   : > { %p1998_p10 = pneg %p1997_p1 }
 0x44c   : > { %v813_v54 = vpop.f32.mrb[16].mxu0 }
 0x44d   : > { %v820_v55 = vmul.f32 %v1900_v53, %v813_v54  ;;  %v1683_v56 = vpop.f32.mrb[17].mxu0 }
 0x44e   : > { %v816_v57 = vpop.f32.mrb[18].mxu0 }
 0x44f   : > { %v1586_v59 = vpack.c.bf16 %v820_v55, %v820_v55  ;;  %v1684_v60 = vpop.f32.mrb[19].mxu0 }
 0x451   : > { %825 = vrot.lane.b32.xlu1 %v1586_v59, %s2115_s24  ;;  %s2120_s24 = smov [#allocation10]  }
 0x454   : > { %v940_v62 = vpop.f32.mrb[20].mxu0 }
 0x455   : > { %v947_v63 = vmul.f32 %v1902_v61, %v940_v62  ;;  %v1695_v1 = vpop.f32.mrb[21].mxu0 }
 0x456   : > { %v943_v2 = vpop.f32.mrb[22].mxu0 }
 0x457   : > { %v1587_v3 = vpack.c.bf16 %v947_v63, %v947_v63  ;;  %v1696_v4 = vpop.f32.mrb[23].mxu0 }
 0x459   : > { %952 = vrot.lane.b32.xlu0 %v1587_v3, %s2116_s7  ;;  %s1999_s7 = sshll.u32 %s2120_s24, 4  ;;  %s2000_s7 = int_to_ptr.vmem [resolvable:$false] %s1999_s7 }
 0x45a   : > { %p2002_p3 = scmp.lt.s32.totalorder %s2516_s29, %s2000_s7 }
 0x45c   : > { %v1067_v6 = vpop.f32.mrb[24].mxu0 }
 0x45d   : > { %v1074_v7 = vmul.f32 %v1904_v5, %v1067_v6  ;;  %v1707_v8 = vpop.f32.mrb[25].mxu0 }
 0x45e   : > { %v1070_v9 = vpop.f32.mrb[26].mxu0 }
 0x45f   : > { %v1588_v12 = vpack.c.bf16 %v1074_v7, %v1074_v7  ;;  %v1708_v14 = vpop.f32.mrb[27].mxu0 }
 0x461   : > { %1079 = vrot.lane.b32.xlu1 %v1588_v12, %s2117_s8  ;;  %s2001_s8 = scalar_lea.vmem %s2000_s7, 256 }
 0x462   : > { %p2003_p5 = scmp.lt.s32.totalorder %s2001_s8, %s1995_s11 }
 0x464   : > { %v1194_v11 = vpop.f32.mrb[28].mxu0  ;;  %p2004_p9 = por %p2003_p5, %p2002_p3 }
 0x465   : > { %v1201_v20 = vmul.f32 %v1906_v16, %v1194_v11  ;;  %v1719_v22 = vpop.f32.mrb[29].mxu0 }
 0x466   : > { %v1197_v23 = vpop.f32.mrb[30].mxu0  ;;  %p2005_p11 = pnand %p2004_p9, %p1998_p10 }
 0x467   : > { %v1589_v25 = vpack.c.bf16 %v1201_v20, %v1201_v20  ;;  %v1720_v26 = vpop.f32.mrb[31].mxu0 }
 0x469   : > { %1206 = vrot.lane.b32.xlu0 %v1589_v25, %s2118_s6 }
 0x46c   : > { %v1321_v27 = vpop.f32.mrb[32].mxu0 }
 0x46d   : > { %v1328_v28 = vmul.f32 %v1908_v13, %v1321_v27  ;;  %v1731_v29 = vpop.f32.mrb[33].mxu0 }
 0x46e   : > { %v1324_v30 = vpop.f32.mrb[34].mxu0 }
 0x46f   : > { %v1590_v31 = vpack.c.bf16 %v1328_v28, %v1328_v28  ;;  %v1732_v32 = vpop.f32.mrb[35].mxu0 }
 0x471   : > { %1333 = vrot.lane.b32.xlu1 %v1590_v31, %s2119_s21 }
 0x496   : > { %v572_v33 = vpop.permute.xlu0 %571 }
 0x497   : > { %575 = vst.msk [vmem:[#allocation3] sm:$0xf] %vm574_vm7, %v572_v33 }
 0x49e   : > { %v699_v34 = vpop.permute.xlu1 %698 }
 0x49f   : > { %702 = vst.msk [vmem:[#allocation3] sm:$0xf] %vm701_vm8, %v699_v34 }
 0x4c3   : > { %v826_v0 = vpop.permute.xlu1 %825 }
 0x4c4   : > { %829 = vst.msk [vmem:[#allocation3] sm:$0xf] %vm828_vm9, %v826_v0 }
 0x4cb   : > { %v953_v35 = vpop.permute.xlu0 %952 }
 0x4cc   : > { %956 = vst.msk [vmem:[#allocation3] sm:$0xf] %vm955_vm10, %v953_v35 }
 0x4d3   : > { %v1080_v36 = vpop.permute.xlu1 %1079 }
 0x4d4   : > { %1083 = vst.msk [vmem:[#allocation3] sm:$0xf] %vm1082_vm11, %v1080_v36 }
 0x4db   : > { %v1207_v37 = vpop.permute.xlu0 %1206 }
 0x4dc   : > { %1210 = vst.msk [vmem:[#allocation3] sm:$0xf] %vm1209_vm12, %v1207_v37 }
 0x4e3   : > { %v1334_v15 = vpop.permute.xlu1 %1333 }
 0x4e4   : > { %1337 = vst.msk [vmem:[#allocation3] sm:$0xf] %vm1336_vm13, %v1334_v15 }
 0x4eb   : > { %v1338_v38 = vld [vmem:[#allocation3] sm:$0xf] }
 0x4ec   : > { %1738 = vmatmul.mubr.msk.bf16.vlgmr.msra.gmra.mrb[32].mxu1 %vm278_vm1, %v1338_v38 }
 0x5bf   : > { %v1400_v19 = vpop.f32.mrb[32].mxu1 }
 0x5c0   : > { %v1401_v21 = vadd.f32 %v1576_v17, %v1400_v19  ;;  %v1739_v39 = vpop.f32.mrb[33].mxu1 }
 0x5c1   : > { %v1403_v40 = vpop.f32.mrb[34].mxu1 }
 0x5c2   : > { %v1740_v41 = vpop.f32.mrb[35].mxu1  ;;  %1406 = vst.msk [vmem:[%s255_s13] sm:$0xff] %vm278_vm1, %v1401_v21 }
 0x5c3   : > { %2008 = shalt.err (!%p2005_p11)
}
 0x5c4   : > { %s2009_s28 = scalar_lea.hbm %s2514_s9, 128  ;;  %s2013_s23 = scalar_lea.hbm %s2568_s4, 256 }
 0x5c5   : > { %p2010_p0 = scmp.ne.s32.totalorder %s2514_s9, %s2009_s28  ;;  %p2014_p6 = scmp.lt.u32.totalorder %s2514_s9, %s2568_s4 }
 0x5c6   : > { %p2015_p7 = scmp.lt.u32.totalorder %s2013_s23, %s2009_s28  ;;  %p2017_p8 = scmp.lt.u32.totalorder %s2009_s28, %s2514_s9 }
 0x5c7   : > { %p2011_p4 = pnand %p2010_p0, %p2583_p2 }
 0x5c8   : > { %p2016_p12 = por %p2015_p7, %p2014_p6 }
 0x5c9   : > { %p2012_p13 = pneg %p2011_p4 }
 0x5ca   : > { %p2018_p1 = por %p2017_p8, %p2016_p12 }
 0x5cc   : > { %p2019_p10 = pnand %p2018_p1, %p2012_p13 }
 0x5ce   : > { %2022 = shalt.err (!%p2019_p10)
}
 0x5cf   : > { %1751 = dma.vmem_to_hbm [thread:$0]  (%p2583_p2), %s2516_s29, 128, %s2514_s9, %s1408_s18  }
 0x5d0 PF: > { %s1434_s12 = sand.u32 1, %s2061_s15   ;;  %p2584_p3 = scmp.ne.s32.totalorder %s2576_s26, 0 }
 0x5d1   : > { %p2585_p5 = scmp.ge.s32.totalorder %s2081_s20, 2  ;;  %s1435_s13 = scalar_lea.sflag [#allocation6], %s1434_s12 }
 0x5d3   : > { %p1765_p9 = pnand %p2585_p5, %p2584_p3 }
 0x5d5   : > { %2056 = dma.done.wait (!%p1765_p9), %s1435_s13, 128  }
 0x5d6   : > { %2058 = vsyncadd (!%p1765_p9), %s1435_s13, 4294967168  ;;  %s21_s20 = sadd.s32 1, %s2081_s20   ;;  %s2586_s15 = smov %s2065_s16 }
 0x5d7   : > { %p18_p11 = scmp.ge.s32.totalorder %s21_s20, 4   ;;  %s2587_s16 = smov %s2069_s17 }
 0x5d8   : > { %s2588_s17 = smov %s2288_s22  ;;  %s2589_s18 = smov %s2077_s19 }
 0x5d9   : > { %s2590_s19 = smov %s2592_s5  ;;  %20 = sbr.rel (!%p18_p11) target bundleno = 7 (0x7), region = 94 }
 0x5e0   :  { %1440 = vsyncpa [#allocation5], 1 }
 0x5e1   :  { %1442 = vsyncpa [#allocation5 + $0x1], 1 }
 0x5e2   :  { %1443 = vsyncpa [#allocation8], 1 }
 0x5e3   :  { %1444 = vsyncpa [#allocation6], 1 }
 0x5e4   :  { %1446 = vsyncpa [#allocation6 + $0x1], 1 }

</bundles_post_ra>
